<compile_context>
chip_gen: v7x
topology: tpu7x:2x2x1
jax: 0.10.0
libtpu: 0.0.40
codegen_flags: <defaults>
</compile_context>

<pallas_src>
import functools

import jax
import jax.numpy as jnp
from jax.experimental import pallas as pl
from jax.experimental.pallas import tpu as pltpu


# ---------------------------------------------------------------------------
# Kernel: pure elementwise multiply on the VPU.  The mask block is either
# (tile_m, tile_d) or (tile_m, 1); the (tile_m, 1) case lane-broadcasts.
# ---------------------------------------------------------------------------
def _shared_dropout_kernel(x_ref, m_ref, o_ref):
    o_ref[...] = x_ref[...] * m_ref[...]


_VMEM_BLOCK_BUDGET = 16 * 1024 * 1024   # bytes for the pipeline's
                                        # double-buffered blocks
_VMEM_LIMIT_BYTES = 48 * 1024 * 1024    # raised scoped-VMEM limit
_MAX_TILE_M = 2048                      # per-step overhead already amortized


def _choose_tiles(N, D, dtype_bytes, mask_cols):
    """VMEM-budgeted (tile_m, tile_d) selection (all static Python ints)."""
    # Sublane alignment: 8 rows for 32-bit dtypes, 16 for 16-bit packing.
    row_align = 8 if dtype_bytes >= 4 else 16

    # Tiny-N case: a full-dim block is always legal and avoids padding.
    if N <= row_align:
        return N, D

    # Tile the feature axis only when D is large; keep tiles lane-dense
    # (large multiple of 128 lanes -> unmasked vector stores) and make the
    # tile divide D exactly so the lane axis is never ragged.
    if D > 2048 and D % 512 == 0:
        tile_d = 2048
        while D % tile_d != 0:
            tile_d //= 2
        tile_d = max(tile_d, 512)
    else:
        tile_d = D

    # Live VMEM per block-row (double-buffered input + output + mask block).
    mask_width = tile_d if mask_cols != 1 else 128  # (tile_m,1) pads to 128 lanes
    per_row = (4 * tile_d + 2 * mask_width) * dtype_bytes
    tile_m = _VMEM_BLOCK_BUDGET // per_row
    tile_m = int(min(tile_m, _MAX_TILE_M, N))
    tile_m = max(row_align, (tile_m // row_align) * row_align)

    # Keep the grid >= 2 steps so v7x's two TensorCores both get work
    # (no-op on single-core v5e/v6e).  Only needed when one block would
    # otherwise cover every row and the feature axis is not tiled.
    if tile_m >= N and N >= 2 * row_align and tile_d == D:
        half = pl.cdiv(N, 2)
        tile_m = max(row_align, ((half + row_align - 1) // row_align) * row_align)

    return tile_m, tile_d


@functools.partial(jax.jit, static_argnames=("training",))
def shared_dropout(x, mask, *, training=True):
    """Pallas implementation of SharedDropout.forward.

    x:    (N, D) float array.
    mask: (N, 1) or (N, D) array (the mask installed via set_mask in the
          original module).  Cast to x.dtype internally.
    training: static; eval path is identity (no kernel launched).
    """
    if not training:
        return x

    N, D = x.shape
    Mn, Md = mask.shape
    assert Mn == N and Md in (1, D), "mask must broadcast against x"

    # Mixed dtypes would promote in-kernel and then narrow on store; cast here.
    mask = mask.astype(x.dtype)

    dtype_bytes = jnp.dtype(x.dtype).itemsize
    tile_m, tile_d = _choose_tiles(N, D, dtype_bytes, Md)

    grid = (pl.cdiv(N, tile_m), pl.cdiv(D, tile_d))

    x_spec = pl.BlockSpec((tile_m, tile_d), lambda i, j: (i, j))
    o_spec = pl.BlockSpec((tile_m, tile_d), lambda i, j: (i, j))
    if Md == 1:
        m_spec = pl.BlockSpec((tile_m, 1), lambda i, j: (i, 0))
    else:
        m_spec = pl.BlockSpec((tile_m, tile_d), lambda i, j: (i, j))

    # NOTE: for tiny inputs a fused XLA multiply is strictly cheaper than any
    # standalone pallas_call; callers embedding this in a larger model may
    # prefer plain `x * mask` below a few hundred KiB.
    return pl.pallas_call(
        _shared_dropout_kernel,
        out_shape=jax.ShapeDtypeStruct((N, D), x.dtype),
        grid=grid,
        in_specs=[x_spec, m_spec],
        out_specs=o_spec,
        compiler_params=pltpu.CompilerParams(
            dimension_semantics=("parallel", "parallel"),
            vmem_limit_bytes=_VMEM_LIMIT_BYTES,
        ),
    )(x, mask)


if __name__ == "__main__":
    key = jax.random.PRNGKey(0)
    kx, km = jax.random.split(key)

    # Small node-feature shapes consistent with the RevGAT usage.
    N, D = 256, 128
    x = jax.random.normal(kx, (N, D), dtype=jnp.float32)

    # Shared dropout mask: one keep/drop decision per node, scaled by 1/p,
    # shared across the feature dimension (installed via set_mask originally).
    p_keep = 0.5
    keep = jax.random.bernoulli(km, p=p_keep, shape=(N, 1))
    mask = keep.astype(jnp.float32) / p_keep  # (N, 1)

    # Training path (hot path) runs the Pallas kernel.
    out = jax.block_until_ready(shared_dropout(x, mask, training=True))
    ref = x * mask
    assert out.shape == x.shape and out.dtype == x.dtype
    assert jnp.allclose(out, ref, atol=0, rtol=0)

    # bf16 I/O path (halves HBM traffic; mask is cast inside the wrapper).
    xb = x.astype(jnp.bfloat16)
    outb = jax.block_until_ready(shared_dropout(xb, mask, training=True))
    refb = xb * mask.astype(jnp.bfloat16)
    assert outb.dtype == jnp.bfloat16
    assert jnp.allclose(outb.astype(jnp.float32), refb.astype(jnp.float32))

    # Full (N, D) mask variant.
    mask_full = jnp.broadcast_to(mask, (N, D))
    out_full = jax.block_until_ready(shared_dropout(x, mask_full, training=True))
    assert jnp.allclose(out_full, ref, atol=0, rtol=0)

    # Ragged-N variant (N not a multiple of the row tile / sublane alignment).
    Nr = 70
    xr = jax.random.normal(kx, (Nr, D), dtype=jnp.float32)
    mr = (jax.random.bernoulli(km, p=p_keep, shape=(Nr, 1))
          .astype(jnp.float32) / p_keep)
    outr = jax.block_until_ready(shared_dropout(xr, mr, training=True))
    assert jnp.allclose(outr, xr * mr, atol=0, rtol=0)

    # Eval path is identity (no kernel).
    out_eval = jax.block_until_ready(shared_dropout(x, mask, training=False))
    assert jnp.array_equal(out_eval, x)

    print("KERNEL_OK")
</pallas_src>

<mosaic_0001>
module attributes {stable_mosaic.version = 11 : i64} {
  func.func @_shared_dropout_kernel(%arg0: i32, %arg1: i32, %arg2: memref<128x128xf32, #tpu.memory_space<vmem>>, %arg3: memref<128x1xf32, #tpu.memory_space<vmem>>, %arg4: memref<128x128xf32, #tpu.memory_space<vmem>>) attributes {dimension_semantics = [#tpu.dimension_semantics<parallel>, #tpu.dimension_semantics<parallel>], iteration_bounds = array<i64: 2, 1>, scalar_prefetch = 0 : i64, scratch_operands = 0 : i64, tpu.core_type = #tpu.core_type<tc>, window_params = [{transform_indices = @transform_0, window_bounds = array<i64: 128, 128>}, {transform_indices = @transform_1, window_bounds = array<i64: 128, 1>}, {transform_indices = @transform_2, window_bounds = array<i64: 128, 128>}]} {
    %c0 = arith.constant 0 : index
    %c0_0 = arith.constant 0 : index
    %0 = vector.load %arg2[%c0, %c0_0] : memref<128x128xf32, #tpu.memory_space<vmem>>, vector<128x128xf32>
    %c0_1 = arith.constant 0 : index
    %c0_2 = arith.constant 0 : index
    %1 = vector.load %arg3[%c0_1, %c0_2] : memref<128x1xf32, #tpu.memory_space<vmem>>, vector<128x1xf32>
    %2 = vector.broadcast %1 : vector<128x1xf32> to vector<128x128xf32>
    %3 = arith.mulf %0, %2 : vector<128x128xf32>
    %c0_3 = arith.constant 0 : index
    %c0_4 = arith.constant 0 : index
    %4 = vector.load %arg4[%c0_3, %c0_4] : memref<128x128xf32, #tpu.memory_space<vmem>>, vector<128x128xf32>
    tpu.vector_store %arg4[%c0_3, %c0_4], %3 {strides = array<i32>} : memref<128x128xf32, #tpu.memory_space<vmem>>, vector<128x128xf32>,
    return
  }
  func.func @transform_0(%arg0: i32, %arg1: i32) -> (i32, i32) {
    %c0_i32 = arith.constant 0 : i32
    return %arg0, %arg1 : i32, i32
  }
  func.func @transform_1(%arg0: i32, %arg1: i32) -> (i32, i32) {
    %c0_i32 = arith.constant 0 : i32
    %c0_i32_0 = arith.constant 0 : i32
    return %arg0, %c0_i32 : i32, i32
  }
  func.func @transform_2(%arg0: i32, %arg1: i32) -> (i32, i32) {
    %c0_i32 = arith.constant 0 : i32
    return %arg0, %arg1 : i32, i32
  }
}

</mosaic_0001>

<bundles_post_ra>
// kernel: shared_dropout.1
= control target key start
LH: loop header
LB: loop body
LE: loop exit
PB: predicated region body
PF: predicated region fallthrough
CT: control target
= control target key end

     0   :  { %7 = vsyncpa [#allocation3], 0  ;;  %s778_s0 = inlined_call_operand.vmem [shape: f32[256,128], index: 0, kind: input, shape index: {}]   ;;  %s779_s1 = inlined_call_operand.vmem [shape: f32[256,1], index: 1, kind: input, shape index: {}]   ;;  %s780_s2 = inlined_call_operand.hbm [shape: f32[256,128], index: 2, kind: output, shape index: {}]  }
   0x1   :  { %9 = vsyncpa [#allocation3 + $0x1], 0  ;;  %s613_s9 = smov 0   ;;  %s615_s10 = smov 0  }
   0x2   :  { %s617_s11 = smov 0   ;;  %s619_s12 = smov 0  }
   0x3   :  { %s621_s13 = smov 0   ;;  %s623_s14 = smov 0  }
   0x4 LB: > { %s438_s15 = sadd.s32 4294967295, %s592_s14   ;;  %s439_s16 = sadd.s32 4294967294, %s592_s14   ;;  %s592_s14 = sphi %s623_s14, %s15_s14   ;;  %s588_s13 = sphi %s621_s13, %s787_s13   ;;  %s584_s12 = sphi %s619_s12, %s786_s12   ;;  %s580_s11 = sphi %s617_s11, %s785_s11   ;;  %s576_s10 = sphi %s615_s10, %s784_s10   ;;  %s572_s9 = sphi %s613_s9, %s783_s9  }
   0x5   : > { %s27_s17 = sadd.s32 1, %s588_s13  ;;  %s90_s18 = sadd.s32 1, %s580_s11 }
   0x6   : > { %p29_p0 = scmp.ge.s32.totalorder %s27_s17, 2  ;;  %p100_p1 = scmp.ne.s32.totalorder %s580_s11, %s576_s10 }
   0x7   : > { %p101_p2 = scmp.eq.s32.totalorder %s438_s15, 1  ;;  %p106_p3 = scmp.ne.s32.totalorder %s576_s10, %s572_s9 }
   0x8   : > { %s789_s17 = smov (%p29_p0, %s27_s17), 0  ;;  %p107_p5 = scmp.eq.s32.totalorder %s439_s16, 1 }
   0x9   : > { %p653_p4 = por %p101_p2, %p100_p1  ;;  %s85_s20 = ssub.s32 %s588_s13, %s789_s17 }
   0xa   : > { %p442_p6 = scmp.ge.s32.totalorder %s592_s14, 1  ;;  %p88_p7 = scmp.eq.s32.totalorder %s85_s20, 0 }
   0xb   : > { %p660_p8 = por %p107_p5, %p106_p3  ;;  %p146_p9 = scmp.lt.s32.totalorder %s592_s14, 3 }
   0xc   : > { %s666_s22 = scalar_select %p88_p7, %s580_s11, %s90_s18  }
   0xd   : > { %p147_p10 = pnand %p442_p6, %p146_p9 }
   0xe   : > { %s444_s23 = sshll.u32 (!%p147_p10), %s584_s12, 4  ;;  %v594_v0 = vmov (!%p147_p10), 0   ;;  %s173_s28 = sand.u32 (!%p147_p10), 1, %s576_s10  }
   0xf   : > { %150 = sbr.rel (%p147_p10) target bundleno = 199 (0xc7), region = 28  ;;  %513 = vset.pattern.permute.xlu1 (!%p147_p10), %v594_v0  ;;  %512 = vset.pattern.permute.xlu0 (!%p147_p10), %v594_v0  ;;  %p177_p11 = scmp.lt.s32.totalorder (!%p147_p10), %s444_s23, 31 }
  0x10   : > { %s443_s4 = sshll.u32 (!%p147_p10), %s173_s28, 7  ;;  %s453_s6 = sshll.u32 (!%p147_p10), %s584_s12, 11 }
  0x11   : > { %s691_s5 = scalar_lea.vmem (!%p147_p10), [#allocation2], %s443_s4  ;;  %s724_s16 = scalar_lea.hbm (!%p147_p10), %s780_s2, %s453_s6 }
  0x12   : > { %s351_s7 = sshll.u32 (!%p147_p10), %s691_s5, 4  ;;  %s732_s12 = scalar_lea.sflag (!%p147_p10), [#allocation3], %s173_s28  ;;  %s726_s7 = int_to_ptr.vmem [resolvable:$true] %s351_s7 }
  0x13   : > { %s514_s18 = scalar_lea.vmem (!%p147_p10), %s726_s7, 2048  ;;  %s595_s20 = smov (!%p147_p10), [#allocation2]  }
  0x14   : > { %p515_p12 = scmp.ne.s32.totalorder (!%p147_p10), %s726_s7, %s514_s18 }
  0x16   : > { %s791_s23 = smov (!%p177_p11, %s444_s23), 31  ;;  %p516_p13 = pnand %p515_p12, %p653_p4 }
  0x17   : > { %s445_s24 = sshll.u32 %s791_s23, 3  ;;  %s518_s23 = sshll.u32 %s595_s20, 4  ;;  %s519_s23 = int_to_ptr.vmem [resolvable:$false] %s518_s23 }
  0x18   : > { %s189_s27 = scalar_lea.vmem %s779_s1, %s445_s24  ;;  %s683_s3 = scalar_lea.vmem %s778_s0, %s445_s24 }
  0x19   : > { %v210_v1 = vld [vmem:[%s189_s27 + $0x10] sm:$0xff]  ;;  %v208_v2 = vld [vmem:[%s189_s27] sm:$0xff]  ;;  %v211_v3 = vld [vmem:[%s189_s27 + $0x18] sm:$0xff]  ;;  %p517_p0 = pneg %p516_p13  ;;  %s520_s24 = scalar_lea.vmem %s519_s23, 4096 }
  0x1a   : > { %236 = vperm.xlu1 %513, %v210_v1   ;;  %226 = vperm.xlu0 %512, %v208_v2   ;;  %v209_v4 = vld [vmem:[%s189_s27 + $0x8] sm:$0xff]  ;;  %v212_v6 = vld [vmem:[%s189_s27 + $0x20] sm:$0xff]  ;;  %v215_v7 = vld [vmem:[%s189_s27 + $0x38] sm:$0xff]  ;;  %p521_p1 = scmp.lt.s32.totalorder %s726_s7, %s519_s23  ;;  %p522_p2 = scmp.lt.s32.totalorder %s520_s24, %s514_s18 }
  0x1b   : > { %v213_v5 = vld [vmem:[%s189_s27 + $0x28] sm:$0xff]  ;;  %v214_v8 = vld [vmem:[%s189_s27 + $0x30] sm:$0xff]  ;;  %v216_v10 = vld [vmem:[%s189_s27 + $0x40] sm:$0xff] }
  0x1c   : > { %v217_v9 = vld [vmem:[%s189_s27 + $0x48] sm:$0xff]  ;;  %v219_v11 = vld [vmem:[%s189_s27 + $0x58] sm:$0xff]  ;;  %v218_v12 = vld [vmem:[%s189_s27 + $0x50] sm:$0xff]  ;;  %p523_p3 = por %p522_p2, %p521_p1 }
  0x1d   : > { %v221_v13 = vld [vmem:[%s189_s27 + $0x68] sm:$0xff]  ;;  %v220_v14 = vld [vmem:[%s189_s27 + $0x60] sm:$0xff]  ;;  %v223_v15 = vld [vmem:[%s189_s27 + $0x78] sm:$0xff] }
  0x1e   : > { %241 = vperm.xlu1 %513, %v211_v3   ;;  %231 = vperm.xlu0 %512, %v209_v4   ;;  %v222_v16 = vld [vmem:[%s189_s27 + $0x70] sm:$0xff]  ;;  %v192_v18 = vld [vmem:[%s683_s3] sm:$0xff]  ;;  %v195_v23 = vld [vmem:[%s683_s3 + $0x18] sm:$0xff]  ;;  %p524_p5 = pnand %p523_p3, %p517_p0 }
  0x1f   : > { %v194_v17 = vld [vmem:[%s683_s3 + $0x10] sm:$0xff]  ;;  %v193_v24 = vld [vmem:[%s683_s3 + $0x8] sm:$0xff]  ;;  %v196_v30 = vld [vmem:[%s683_s3 + $0x20] sm:$0xff] }
  0x20   : > { %v197_v29 = vld [vmem:[%s683_s3 + $0x28] sm:$0xff]  ;;  %v199_v35 = vld [vmem:[%s683_s3 + $0x38] sm:$0xff]  ;;  %v198_v36 = vld [vmem:[%s683_s3 + $0x30] sm:$0xff] }
  0x21   : > { %v201_v41 = vld [vmem:[%s683_s3 + $0x48] sm:$0xff]  ;;  %v200_v42 = vld [vmem:[%s683_s3 + $0x40] sm:$0xff]  ;;  %v203_v47 = vld [vmem:[%s683_s3 + $0x58] sm:$0xff] }
  0x22   : > { %251 = vperm.xlu1 %513, %v213_v5   ;;  %246 = vperm.xlu0 %512, %v212_v6   ;;  %v202_v48 = vld [vmem:[%s683_s3 + $0x50] sm:$0xff]  ;;  %v205_v53 = vld [vmem:[%s683_s3 + $0x68] sm:$0xff]  ;;  %v204_v54 = vld [vmem:[%s683_s3 + $0x60] sm:$0xff] }
  0x23   : > { %v207_v59 = vld [vmem:[%s683_s3 + $0x78] sm:$0xff]  ;;  %v206_v60 = vld [vmem:[%s683_s3 + $0x70] sm:$0xff] }
  0x26   : > { %261 = vperm.xlu1 %513, %v215_v7   ;;  %256 = vperm.xlu0 %512, %v214_v8  }
  0x2a   : > { %271 = vperm.xlu1 %513, %v217_v9   ;;  %266 = vperm.xlu0 %512, %v216_v10  }
  0x2e   : > { %281 = vperm.xlu1 %513, %v219_v11   ;;  %276 = vperm.xlu0 %512, %v218_v12  }
  0x32   : > { %291 = vperm.xlu1 %513, %v221_v13   ;;  %286 = vperm.xlu0 %512, %v220_v14  }
  0x36   : > { %301 = vperm.xlu1 %513, %v223_v15   ;;  %296 = vperm.xlu0 %512, %v222_v16  }
  0x99   : > { %v237_v19 = vpop.permute.xlu1 %236  ;;  %v227_v20 = vpop.permute.xlu0 %226 }
  0x9a   : > { %v306_v21 = vmul.f32 %v237_v19, %v194_v17  ;;  %v304_v22 = vmul.f32 %v227_v20, %v192_v18 }
  0x9c   : > { %322 = vst [vmem:[%s691_s5 + $0x10] sm:$0xff] %v306_v21  ;;  %320 = vst [vmem:[%s691_s5] sm:$0xff] %v304_v22 }
  0x9d   : > { %v242_v25 = vpop.permute.xlu1 %241  ;;  %v232_v26 = vpop.permute.xlu0 %231 }
  0x9e   : > { %v307_v27 = vmul.f32 %v242_v25, %v195_v23  ;;  %v305_v28 = vmul.f32 %v232_v26, %v193_v24 }
  0xa0   : > { %323 = vst [vmem:[%s691_s5 + $0x18] sm:$0xff] %v307_v27  ;;  %321 = vst [vmem:[%s691_s5 + $0x8] sm:$0xff] %v305_v28 }
  0xa1   : > { %v252_v31 = vpop.permute.xlu1 %251  ;;  %v247_v32 = vpop.permute.xlu0 %246 }
  0xa2   : > { %v309_v33 = vmul.f32 %v252_v31, %v197_v29  ;;  %v308_v34 = vmul.f32 %v247_v32, %v196_v30 }
  0xa4   : > { %325 = vst [vmem:[%s691_s5 + $0x28] sm:$0xff] %v309_v33  ;;  %324 = vst [vmem:[%s691_s5 + $0x20] sm:$0xff] %v308_v34 }
  0xa5   : > { %v262_v37 = vpop.permute.xlu1 %261  ;;  %v257_v38 = vpop.permute.xlu0 %256 }
  0xa6   : > { %v311_v39 = vmul.f32 %v262_v37, %v199_v35  ;;  %v310_v40 = vmul.f32 %v257_v38, %v198_v36 }
  0xa8   : > { %327 = vst [vmem:[%s691_s5 + $0x38] sm:$0xff] %v311_v39  ;;  %326 = vst [vmem:[%s691_s5 + $0x30] sm:$0xff] %v310_v40 }
  0xa9   : > { %v272_v43 = vpop.permute.xlu1 %271  ;;  %v267_v44 = vpop.permute.xlu0 %266 }
  0xaa   : > { %v313_v45 = vmul.f32 %v272_v43, %v201_v41  ;;  %v312_v46 = vmul.f32 %v267_v44, %v200_v42 }
  0xac   : > { %329 = vst [vmem:[%s691_s5 + $0x48] sm:$0xff] %v313_v45  ;;  %328 = vst [vmem:[%s691_s5 + $0x40] sm:$0xff] %v312_v46 }
  0xad   : > { %v282_v49 = vpop.permute.xlu1 %281  ;;  %v277_v50 = vpop.permute.xlu0 %276 }
  0xae   : > { %v315_v51 = vmul.f32 %v282_v49, %v203_v47  ;;  %v314_v52 = vmul.f32 %v277_v50, %v202_v48 }
  0xb0   : > { %331 = vst [vmem:[%s691_s5 + $0x58] sm:$0xff] %v315_v51  ;;  %330 = vst [vmem:[%s691_s5 + $0x50] sm:$0xff] %v314_v52 }
  0xb1   : > { %v292_v55 = vpop.permute.xlu1 %291  ;;  %v287_v56 = vpop.permute.xlu0 %286 }
  0xb2   : > { %v317_v57 = vmul.f32 %v292_v55, %v205_v53  ;;  %v316_v58 = vmul.f32 %v287_v56, %v204_v54 }
  0xb4   : > { %333 = vst [vmem:[%s691_s5 + $0x68] sm:$0xff] %v317_v57  ;;  %332 = vst [vmem:[%s691_s5 + $0x60] sm:$0xff] %v316_v58 }
  0xb5   : > { %v302_v61 = vpop.permute.xlu1 %301  ;;  %v297_v62 = vpop.permute.xlu0 %296 }
  0xb6   : > { %v319_v63 = vmul.f32 %v302_v61, %v207_v59  ;;  %v318_v0 = vmul.f32 %v297_v62, %v206_v60 }
  0xb8   : > { %335 = vst [vmem:[%s691_s5 + $0x78] sm:$0xff] %v319_v63  ;;  %334 = vst [vmem:[%s691_s5 + $0x70] sm:$0xff] %v318_v0 }
  0xb9   : > { %527 = shalt.err (!%p524_p5)
}
  0xba   : > { %s528_s25 = scalar_lea.hbm %s724_s16, 2048  ;;  %s532_s28 = scalar_lea.hbm %s780_s2, 4096 }
  0xbb   : > { %p529_p6 = scmp.ne.s32.totalorder %s724_s16, %s528_s25  ;;  %p533_p10 = scmp.lt.u32.totalorder %s724_s16, %s780_s2 }
  0xbc   : > { %p534_p11 = scmp.lt.u32.totalorder %s532_s28, %s528_s25  ;;  %p536_p13 = scmp.lt.u32.totalorder %s528_s25, %s724_s16 }
  0xbd   : > { %p530_p7 = pnand %p529_p6, %p653_p4 }
  0xbe   : > { %p535_p12 = por %p534_p11, %p533_p10 }
  0xbf   : > { %p531_p9 = pneg %p530_p7 }
  0xc0   : > { %p537_p0 = por %p536_p13, %p535_p12 }
  0xc2   : > { %p538_p1 = pnand %p537_p0, %p531_p9 }
  0xc4   : > { %541 = shalt.err (!%p538_p1)
}
  0xc5   : > { %s596_s3 = smov 128   ;;  %s597_s4 = smov 8  }
  0xc6   : > { %454 = dma.vmem_to_hbm [thread:$0]  (%p653_p4), %s726_s7, 2048, %s724_s16, %s732_s12, %s596_s3, %s596_s3, %s597_s4  }
  0xc7 PF: > { %p460_p2 = scmp.ge.s32.totalorder %s592_s14, 2  ;;  %s366_s5 = sand.u32 1, %s572_s9  }
  0xc8   : > { %s367_s6 = scalar_lea.sflag [#allocation3], %s366_s5 }
  0xc9   : > { %p457_p3 = pnand %p460_p2, %p660_p8 }
  0xcb   : > { %567 = dma.done.wait (!%p457_p3), %s367_s6, 2048  }
  0xcc   : > { %569 = vsyncadd (!%p457_p3), %s367_s6, 4294965248  ;;  %s15_s14 = sadd.s32 1, %s592_s14   ;;  %s783_s9 = smov %s576_s10 }
  0xcd   : > { %p12_p5 = scmp.ge.s32.totalorder %s15_s14, 4   ;;  %s784_s10 = smov %s580_s11 }
  0xce   : > { %s785_s11 = smov %s666_s22  ;;  %s786_s12 = smov %s588_s13 }
  0xcf   : > { %s787_s13 = smov %s789_s17  ;;  %14 = sbr.rel (!%p12_p5) target bundleno = 4 (0x4), region = 66 }
  0xd6   :  { %372 = vsyncpa [#allocation3], 1 }
  0xd7   :  { %374 = vsyncpa [#allocation3 + $0x1], 1 }

</bundles_post_ra>
